<compile_context>
chip_gen: v7x
topology: tpu7x:2x2x1
jax: 0.10.0
libtpu: 0.0.40
codegen_flags: <defaults>
</compile_context>

<pallas_src>
import functools

import numpy as np

import jax
import jax.numpy as jnp
from jax.experimental import pallas as pl
from jax.experimental.pallas import tpu as pltpu

EPS = 1e-5  # nn.InstanceNorm2d default eps


# ------------------------------- the kernel ----------------------------------
def resnet_block_kernel(x_ref, coords_ref, w1_ref, w2_ref, o_ref, patch_ref, *,
                        bn, H, W, dilation, compute_dtype):
    # x_ref/o_ref : (C, bn*H*W)  lane-dense, channel-major activations (f32)
    # coords_ref  : (2, bn*H*W)  int32 [row-in-image; col-in-image] per lane
    # w1_ref/w2_ref: (C, 9*C)    dense 2-D weights, (kh,kw)-major / ch-minor K
    # patch_ref   : (9*C, bn*H*W) VMEM scratch, compute_dtype
    C = x_ref.shape[0]
    HW = H * W
    L = bn * HW
    inv_hw = 1.0 / HW

    x_f32 = x_ref[...]                       # kept for the residual add
    w1 = w1_ref[...]
    w2 = w2_ref[...]
    row_in_img = coords_ref[0:1, :]          # (1, L) int32
    col_in_img = coords_ref[1:2, :]          # (1, L) int32

    def make_roller(arr):
        cache = {}

        def roll_by(shift):
            s = shift % L
            if s not in cache:
                cache[s] = arr if s == 0 else pltpu.roll(arr, s, axis=1)
            return cache[s]

        return roll_by

    def build_patch(act, d):
        """Write the 9 reflection-padded, dilation-d taps of `act` (C, L) into
        patch_ref as a (9C, L) matrix (rows: (kh,kw)-major, channel-minor).

        Interior positions of a tap are a pure lane roll of the flat image;
        the d boundary rows/cols (which also cover the roll wrap-around and
        any cross-image contamination) are overwritten with the reflected
        source via jnp.where on the constant row/col masks.  Rolls use the
        XLU slot, selects the VPU -- no masked stores, no relayout copies."""
        roll_act = make_roller(act)
        for kh in range(3):
            dy = (kh - 1) * d
            # ---- row direction: rt[y, x] = act[reflect(y + dy), x] --------
            if dy == 0:
                rt = act
            else:
                rt = roll_act(-dy * W)
                if dy < 0:                       # top d rows reflect
                    for y in range(d):
                        rt = jnp.where(row_in_img == y,
                                       roll_act((2 * y - d) * W), rt)
                else:                            # bottom d rows reflect
                    for j in range(d):
                        rt = jnp.where(row_in_img == H - 1 - j,
                                       roll_act((d - 2 * j) * W), rt)
            # ---- column direction: tap[y, x] = rt[y, reflect(x + dx)] -----
            roll_rt = make_roller(rt)
            for kw in range(3):
                dx = (kw - 1) * d
                if dx == 0:
                    tap = rt
                else:
                    tap = roll_rt(-dx)
                    if dx < 0:                   # left d cols reflect
                        for xx in range(d):
                            tap = jnp.where(col_in_img == xx,
                                            roll_rt(2 * xx - d), tap)
                    else:                        # right d cols reflect
                        for j in range(d):
                            tap = jnp.where(col_in_img == W - 1 - j,
                                            roll_rt(d - 2 * j), tap)
                t = kh * 3 + kw
                patch_ref[t * C:(t + 1) * C, :] = tap

    def instance_norm(acc):
        """Per-image InstanceNorm2d (affine=False, biased var) on the (C, L)
        f32 accumulator.  One-pass stats per 128-aligned HW lane segment."""
        segs = []
        for i in range(bn):
            seg = acc[:, i * HW:(i + 1) * HW]            # aligned lane slice
            mean = jnp.sum(seg, axis=1, keepdims=True) * inv_hw
            ex2 = jnp.sum(seg * seg, axis=1, keepdims=True) * inv_hw
            rstd = jax.lax.rsqrt(ex2 - mean * mean + EPS)
            segs.append((seg - mean) * rstd)
        return segs[0] if bn == 1 else jnp.concatenate(segs, axis=1)

    # --- stage 1: ReflectionPad(d) -> conv(dil=d) -> IN -> ReLU -------------
    build_patch(x_f32.astype(compute_dtype), dilation)
    a1 = jnp.dot(w1, patch_ref[...], preferred_element_type=jnp.float32)
    h = jnp.maximum(instance_norm(a1), 0.0)

    # --- stage 2: ReflectionPad(1) -> conv -> IN (VMEM-resident h) ----------
    build_patch(h.astype(compute_dtype), 1)
    a2 = jnp.dot(w2, patch_ref[...], preferred_element_type=jnp.float32)

    # --- residual ------------------------------------------------------------
    o_ref[...] = x_f32 + instance_norm(a2)


# ------------------------------- wrapper --------------------------------------
def _vmem_capacity_bytes():
    try:
        info = pltpu.get_tpu_info()
        cap = getattr(info, "vmem_capacity_bytes", None)
        if cap:
            return int(cap)
    except Exception:
        pass
    return 64 << 20          # assume the most constrained generation (v7x)


def _pick_batch_block(N, C, HW, cd_bytes, budget_bytes):
    """Largest divisor of N that (a) leaves >= 2 grid steps when N >= 2 (keeps
    both v7x TensorCores busy; harmless on 1-TC v5e/v6e) and (b) keeps the
    per-step VMEM working set under budget_bytes."""
    best = 1
    max_bn = max(1, min(N // 2, 8))
    for cand in range(1, max_bn + 1):
        if N % cand:
            continue
        L = cand * HW
        need = (4 * C * L * 4            # double-buffered f32 in/out blocks
                + 9 * C * L * cd_bytes   # im2col patch scratch
                + 12 * C * L * 4)        # rolls / taps / accumulator temps
        if need <= budget_bytes:
            best = cand
    return best


def resnet_block_forward(x, params, dilation=1, compute_dtype=jnp.float32):
    """x: (N, C, H, W) float32.  Matches ResnetBlock.forward.
    compute_dtype=jnp.bfloat16 runs the patch/MXU path in bf16 (f32 stats and
    accumulation); keep f32 on v5e (no bf16 VALU)."""
    w1, b1, w2, b2 = params
    del b1, b2  # bias before InstanceNorm(affine=False) cancels exactly
    x = x.astype(jnp.float32)
    N, C, H, W = x.shape
    HW = H * W
    assert 1 <= dilation <= min(H, W) - 1, "reflection pad must be < spatial dim"
    assert HW % 128 == 0, "H*W must be a multiple of 128 for the lane-dense layout"
    # TODO(synk): for H*W not a multiple of 128, pad the flattened spatial dim
    # in the wrapper (or use bn=N full-array blocks) instead of asserting.

    cd_bytes = jnp.dtype(compute_dtype).itemsize
    cap = _vmem_capacity_bytes()
    if cap >= (96 << 20):                 # v5e / v6e: 128 MiB physical VMEM
        budget_bytes, vmem_limit = 16 << 20, 96 << 20
    else:                                 # v7x: 64 MiB physical VMEM
        budget_bytes, vmem_limit = 6 << 20, 40 << 20

    bn = _pick_batch_block(N, C, HW, cd_bytes, budget_bytes)
    L = bn * HW

    # Wrapper-side layout plumbing (no compute): dense 2-D weights with
    # (kh,kw)-major / channel-minor K ordering, channel-major lane-dense
    # activations (C, N*H*W), and constant per-lane (row, col) coordinates.
    w1_2d = w1.transpose(0, 2, 3, 1).reshape(C, 9 * C).astype(compute_dtype)
    w2_2d = w2.transpose(0, 2, 3, 1).reshape(C, 9 * C).astype(compute_dtype)
    x_cm = jnp.transpose(x.reshape(N, C, HW), (1, 0, 2)).reshape(C, N * HW)
    pos = np.arange(L, dtype=np.int64) % HW
    coords = jnp.asarray(np.stack([pos // W, pos % W]).astype(np.int32))

    kernel = functools.partial(resnet_block_kernel, bn=bn, H=H, W=W,
                               dilation=dilation, compute_dtype=compute_dtype)

    out = pl.pallas_call(
        kernel,
        out_shape=jax.ShapeDtypeStruct((C, N * HW), jnp.float32),
        grid_spec=pltpu.PrefetchScalarGridSpec(
            num_scalar_prefetch=0,
            grid=(N // bn,),
            in_specs=[
                pl.BlockSpec((C, L), lambda n: (0, n)),
                pl.BlockSpec((2, L), lambda n: (0, 0)),
                # TODO(synk): mark the two grid-invariant weight tiles as
                # single-buffered (pipeline_mode=pl.Buffered(1)) once verified
                # on the target jax build; double buffering them only wastes
                # VMEM (matters for large C on v7x's 64 MiB VMEM).
                pl.BlockSpec((C, 9 * C), lambda n: (0, 0)),
                pl.BlockSpec((C, 9 * C), lambda n: (0, 0)),
            ],
            out_specs=pl.BlockSpec((C, L), lambda n: (0, n)),
            scratch_shapes=[pltpu.VMEM((9 * C, L), compute_dtype)],
        ),
        compiler_params=pltpu.CompilerParams(
            dimension_semantics=("parallel",),
            vmem_limit_bytes=vmem_limit),
    )(x_cm, coords, w1_2d, w2_2d)

    # TODO(synk): for very large C/H/W on v7x (64 MiB VMEM) add spatial tiling
    # of H*W with a halo plus two-pass (accumulate-then-normalize) InstanceNorm.
    out = jnp.transpose(out.reshape(C, N, HW), (1, 0, 2))
    return out.reshape(N, C, H, W)


# ----------------------- pure-JAX reference ---------------------------------
def _ref_conv(x, w, b, d):
    xp = jnp.pad(x, ((0, 0), (0, 0), (d, d), (d, d)), mode="reflect")
    y = jax.lax.conv_general_dilated(
        xp, w, window_strides=(1, 1), padding="VALID",
        rhs_dilation=(d, d), dimension_numbers=("NCHW", "OIHW", "NCHW"))
    return y + b[None, :, None, None]


def _ref_instance_norm(x):
    mean = jnp.mean(x, axis=(2, 3), keepdims=True)
    var = jnp.mean((x - mean) ** 2, axis=(2, 3), keepdims=True)
    return (x - mean) * jax.lax.rsqrt(var + EPS)


def resnet_block_ref(x, params, dilation=1):
    w1, b1, w2, b2 = params
    h = _ref_instance_norm(_ref_conv(x, w1, b1, dilation))
    h = jnp.maximum(h, 0.0)
    h = _ref_instance_norm(_ref_conv(h, w2, b2, 1))
    return x + h


# ----------------------------------------------------------------------------
def init_params(key, dim):
    # Deterministic init mimicking PyTorch Conv2d default (U[-1/sqrt(fan_in), +]).
    k1, k2, k3, k4 = jax.random.split(key, 4)
    fan_in = dim * 3 * 3
    bound = 1.0 / jnp.sqrt(fan_in)
    w1 = jax.random.uniform(k1, (dim, dim, 3, 3), jnp.float32, -bound, bound)
    b1 = jax.random.uniform(k2, (dim,), jnp.float32, -bound, bound)
    w2 = jax.random.uniform(k3, (dim, dim, 3, 3), jnp.float32, -bound, bound)
    b2 = jax.random.uniform(k4, (dim,), jnp.float32, -bound, bound)
    return (w1, b1, w2, b2)


if __name__ == "__main__":
    key = jax.random.PRNGKey(0)
    kx, kx2, kp = jax.random.split(key, 3)

    C = 8
    params = init_params(kp, C)

    # (1) default dilation=1, N=2 -> grid of 2 parallel steps.
    x = jax.random.normal(kx, (2, C, 16, 16), jnp.float32)
    out = jax.block_until_ready(resnet_block_forward(x, params, dilation=1))
    ref = jax.block_until_ready(resnet_block_ref(x, params, dilation=1))
    assert out.shape == x.shape
    assert jnp.allclose(out, ref, atol=1e-4, rtol=1e-4), \
        float(jnp.max(jnp.abs(out - ref)))

    # (2) dilated block (dilation=2): exercises the general reflect-pad path.
    out2 = jax.block_until_ready(resnet_block_forward(x, params, dilation=2))
    ref2 = jax.block_until_ready(resnet_block_ref(x, params, dilation=2))
    assert jnp.allclose(out2, ref2, atol=1e-4, rtol=1e-4), \
        float(jnp.max(jnp.abs(out2 - ref2)))

    # (3) N=4 -> bn=2 images fused into one MXU push per stage per grid step.
    x4 = jax.random.normal(kx2, (4, C, 16, 16), jnp.float32)
    out4 = jax.block_until_ready(resnet_block_forward(x4, params, dilation=1))
    ref4 = jax.block_until_ready(resnet_block_ref(x4, params, dilation=1))
    assert jnp.allclose(out4, ref4, atol=1e-4, rtol=1e-4), \
        float(jnp.max(jnp.abs(out4 - ref4)))

    # bf16 compute_dtype (MXU operands) is supported for v6e/v7x; the
    # self-test above sticks to the f32 path that matches PyTorch semantics.
    print("KERNEL_OK")
</pallas_src>

<mosaic_0001>
module attributes {stable_mosaic.version = 11 : i64} {
  func.func @resnet_block_kernel(%arg0: i32, %arg1: memref<8x256xf32, #tpu.memory_space<vmem>>, %arg2: memref<2x256xi32, #tpu.memory_space<vmem>>, %arg3: memref<8x72xf32, #tpu.memory_space<vmem>>, %arg4: memref<8x72xf32, #tpu.memory_space<vmem>>, %arg5: memref<8x256xf32, #tpu.memory_space<vmem>>, %arg6: memref<72x256xf32, #tpu.memory_space<vmem>>) attributes {dimension_semantics = [#tpu.dimension_semantics<parallel>], iteration_bounds = array<i64: 2>, scalar_prefetch = 0 : i64, scratch_operands = 1 : i64, tpu.core_type = #tpu.core_type<tc>, window_params = [{transform_indices = @transform_0, window_bounds = array<i64: 8, 256>}, {pipeline_mode = #tpu.pipeline_mode<synchronous>, transform_indices = @transform_1, window_bounds = array<i64: 2, 256>}, {pipeline_mode = #tpu.pipeline_mode<synchronous>, transform_indices = @transform_2, window_bounds = array<i64: 8, 72>}, {pipeline_mode = #tpu.pipeline_mode<synchronous>, transform_indices = @transform_3, window_bounds = array<i64: 8, 72>}, {transform_indices = @transform_4, window_bounds = array<i64: 8, 256>}]} {
    %c0 = arith.constant 0 : index
    %c0_0 = arith.constant 0 : index
    %0 = vector.load %arg1[%c0, %c0_0] : memref<8x256xf32, #tpu.memory_space<vmem>>, vector<8x256xf32>
    %c0_1 = arith.constant 0 : index
    %c0_2 = arith.constant 0 : index
    %1 = vector.load %arg3[%c0_1, %c0_2] : memref<8x72xf32, #tpu.memory_space<vmem>>, vector<8x72xf32>
    %c0_3 = arith.constant 0 : index
    %c0_4 = arith.constant 0 : index
    %2 = vector.load %arg4[%c0_3, %c0_4] : memref<8x72xf32, #tpu.memory_space<vmem>>, vector<8x72xf32>
    %c0_5 = arith.constant 0 : index
    %c0_6 = arith.constant 0 : index
    %3 = vector.load %arg2[%c0_5, %c0_6] : memref<2x256xi32, #tpu.memory_space<vmem>>, vector<1x256xi32>
    %c1 = arith.constant 1 : index
    %c0_7 = arith.constant 0 : index
    %4 = vector.load %arg2[%c1, %c0_7] : memref<2x256xi32, #tpu.memory_space<vmem>>, vector<1x256xi32>
    %c16_i32 = arith.constant 16 : i32
    %5 = tpu.dynamic_rotate %0 by %c16_i32 dim 1 : vector<8x256xf32>, i32 -> vector<8x256xf32>
    %c0_i32 = arith.constant 0 : i32
    %6 = vector.broadcast %c0_i32 : i32 to vector<1x256xi32>
    %7 = arith.cmpi eq, %3, %6 : vector<1x256xi32>
    %c240_i32 = arith.constant 240 : i32
    %8 = tpu.dynamic_rotate %0 by %c240_i32 dim 1 : vector<8x256xf32>, i32 -> vector<8x256xf32>
    %9 = vector.shape_cast %7 : vector<1x256xi1> to vector<1x256xi1>
    %10 = vector.broadcast %9 : vector<1x256xi1> to vector<8x256xi1>
    %11 = arith.select %10, %8, %5 : vector<8x256xi1>, vector<8x256xf32>
    %c1_i32 = arith.constant 1 : i32
    %12 = tpu.dynamic_rotate %11 by %c1_i32 dim 1 : vector<8x256xf32>, i32 -> vector<8x256xf32>
    %c0_i32_8 = arith.constant 0 : i32
    %13 = vector.broadcast %c0_i32_8 : i32 to vector<1x256xi32>
    %14 = arith.cmpi eq, %4, %13 : vector<1x256xi32>
    %c255_i32 = arith.constant 255 : i32
    %15 = tpu.dynamic_rotate %11 by %c255_i32 dim 1 : vector<8x256xf32>, i32 -> vector<8x256xf32>
    %16 = vector.shape_cast %14 : vector<1x256xi1> to vector<1x256xi1>
    %17 = vector.broadcast %16 : vector<1x256xi1> to vector<8x256xi1>
    %18 = arith.select %17, %15, %12 : vector<8x256xi1>, vector<8x256xf32>
    %c0_9 = arith.constant 0 : index
    %c0_10 = arith.constant 0 : index
    %19 = vector.load %arg6[%c0_9, %c0_10] : memref<72x256xf32, #tpu.memory_space<vmem>>, vector<8x256xf32>
    tpu.vector_store %arg6[%c0_9, %c0_10], %18 {strides = array<i32>} : memref<72x256xf32, #tpu.memory_space<vmem>>, vector<8x256xf32>,
    %c8 = arith.constant 8 : index
    %c0_11 = arith.constant 0 : index
    %20 = vector.load %arg6[%c8, %c0_11] : memref<72x256xf32, #tpu.memory_space<vmem>>, vector<8x256xf32>
    tpu.vector_store %arg6[%c8, %c0_11], %11 {strides = array<i32>} : memref<72x256xf32, #tpu.memory_space<vmem>>, vector<8x256xf32>,
    %c15_i32 = arith.constant 15 : i32
    %21 = vector.broadcast %c15_i32 : i32 to vector<1x256xi32>
    %22 = arith.cmpi eq, %4, %21 : vector<1x256xi32>
    %23 = vector.shape_cast %22 : vector<1x256xi1> to vector<1x256xi1>
    %24 = vector.broadcast %23 : vector<1x256xi1> to vector<8x256xi1>
    %25 = arith.select %24, %12, %15 : vector<8x256xi1>, vector<8x256xf32>
    %c16 = arith.constant 16 : index
    %c0_12 = arith.constant 0 : index
    %26 = vector.load %arg6[%c16, %c0_12] : memref<72x256xf32, #tpu.memory_space<vmem>>, vector<8x256xf32>
    tpu.vector_store %arg6[%c16, %c0_12], %25 {strides = array<i32>} : memref<72x256xf32, #tpu.memory_space<vmem>>, vector<8x256xf32>,
    %c1_i32_13 = arith.constant 1 : i32
    %27 = tpu.dynamic_rotate %0 by %c1_i32_13 dim 1 : vector<8x256xf32>, i32 -> vector<8x256xf32>
    %c0_i32_14 = arith.constant 0 : i32
    %28 = vector.broadcast %c0_i32_14 : i32 to vector<1x256xi32>
    %29 = arith.cmpi eq, %4, %28 : vector<1x256xi32>
    %c255_i32_15 = arith.constant 255 : i32
    %30 = tpu.dynamic_rotate %0 by %c255_i32_15 dim 1 : vector<8x256xf32>, i32 -> vector<8x256xf32>
    %31 = vector.shape_cast %29 : vector<1x256xi1> to vector<1x256xi1>
    %32 = vector.broadcast %31 : vector<1x256xi1> to vector<8x256xi1>
    %33 = arith.select %32, %30, %27 : vector<8x256xi1>, vector<8x256xf32>
    %c24 = arith.constant 24 : index
    %c0_16 = arith.constant 0 : index
    %34 = vector.load %arg6[%c24, %c0_16] : memref<72x256xf32, #tpu.memory_space<vmem>>, vector<8x256xf32>
    tpu.vector_store %arg6[%c24, %c0_16], %33 {strides = array<i32>} : memref<72x256xf32, #tpu.memory_space<vmem>>, vector<8x256xf32>,
    %c32 = arith.constant 32 : index
    %c0_17 = arith.constant 0 : index
    %35 = vector.load %arg6[%c32, %c0_17] : memref<72x256xf32, #tpu.memory_space<vmem>>, vector<8x256xf32>
    tpu.vector_store %arg6[%c32, %c0_17], %0 {strides = array<i32>} : memref<72x256xf32, #tpu.memory_space<vmem>>, vector<8x256xf32>,
    %c15_i32_18 = arith.constant 15 : i32
    %36 = vector.broadcast %c15_i32_18 : i32 to vector<1x256xi32>
    %37 = arith.cmpi eq, %4, %36 : vector<1x256xi32>
    %38 = vector.shape_cast %37 : vector<1x256xi1> to vector<1x256xi1>
    %39 = vector.broadcast %38 : vector<1x256xi1> to vector<8x256xi1>
    %40 = arith.select %39, %27, %30 : vector<8x256xi1>, vector<8x256xf32>
    %c40 = arith.constant 40 : index
    %c0_19 = arith.constant 0 : index
    %41 = vector.load %arg6[%c40, %c0_19] : memref<72x256xf32, #tpu.memory_space<vmem>>, vector<8x256xf32>
    tpu.vector_store %arg6[%c40, %c0_19], %40 {strides = array<i32>} : memref<72x256xf32, #tpu.memory_space<vmem>>, vector<8x256xf32>,
    %c15_i32_20 = arith.constant 15 : i32
    %42 = vector.broadcast %c15_i32_20 : i32 to vector<1x256xi32>
    %43 = arith.cmpi eq, %3, %42 : vector<1x256xi32>
    %44 = vector.shape_cast %43 : vector<1x256xi1> to vector<1x256xi1>
    %45 = vector.broadcast %44 : vector<1x256xi1> to vector<8x256xi1>
    %46 = arith.select %45, %5, %8 : vector<8x256xi1>, vector<8x256xf32>
    %c1_i32_21 = arith.constant 1 : i32
    %47 = tpu.dynamic_rotate %46 by %c1_i32_21 dim 1 : vector<8x256xf32>, i32 -> vector<8x256xf32>
    %c0_i32_22 = arith.constant 0 : i32
    %48 = vector.broadcast %c0_i32_22 : i32 to vector<1x256xi32>
    %49 = arith.cmpi eq, %4, %48 : vector<1x256xi32>
    %c255_i32_23 = arith.constant 255 : i32
    %50 = tpu.dynamic_rotate %46 by %c255_i32_23 dim 1 : vector<8x256xf32>, i32 -> vector<8x256xf32>
    %51 = vector.shape_cast %49 : vector<1x256xi1> to vector<1x256xi1>
    %52 = vector.broadcast %51 : vector<1x256xi1> to vector<8x256xi1>
    %53 = arith.select %52, %50, %47 : vector<8x256xi1>, vector<8x256xf32>
    %c48 = arith.constant 48 : index
    %c0_24 = arith.constant 0 : index
    %54 = vector.load %arg6[%c48, %c0_24] : memref<72x256xf32, #tpu.memory_space<vmem>>, vector<8x256xf32>
    tpu.vector_store %arg6[%c48, %c0_24], %53 {strides = array<i32>} : memref<72x256xf32, #tpu.memory_space<vmem>>, vector<8x256xf32>,
    %c56 = arith.constant 56 : index
    %c0_25 = arith.constant 0 : index
    %55 = vector.load %arg6[%c56, %c0_25] : memref<72x256xf32, #tpu.memory_space<vmem>>, vector<8x256xf32>
    tpu.vector_store %arg6[%c56, %c0_25], %46 {strides = array<i32>} : memref<72x256xf32, #tpu.memory_space<vmem>>, vector<8x256xf32>,
    %c15_i32_26 = arith.constant 15 : i32
    %56 = vector.broadcast %c15_i32_26 : i32 to vector<1x256xi32>
    %57 = arith.cmpi eq, %4, %56 : vector<1x256xi32>
    %58 = vector.shape_cast %57 : vector<1x256xi1> to vector<1x256xi1>
    %59 = vector.broadcast %58 : vector<1x256xi1> to vector<8x256xi1>
    %60 = arith.select %59, %47, %50 : vector<8x256xi1>, vector<8x256xf32>
    %c64 = arith.constant 64 : index
    %c0_27 = arith.constant 0 : index
    %61 = vector.load %arg6[%c64, %c0_27] : memref<72x256xf32, #tpu.memory_space<vmem>>, vector<8x256xf32>
    tpu.vector_store %arg6[%c64, %c0_27], %60 {strides = array<i32>} : memref<72x256xf32, #tpu.memory_space<vmem>>, vector<8x256xf32>,
    %c0_28 = arith.constant 0 : index
    %c0_29 = arith.constant 0 : index
    %62 = vector.load %arg6[%c0_28, %c0_29] : memref<72x256xf32, #tpu.memory_space<vmem>>, vector<72x256xf32>
    %cst = arith.constant dense<0.000000e+00> : vector<8x256xf32>
    %63 = tpu.matmul %1, %62, %cst {dimension_numbers = #tpu.dot_dimension_numbers<[1], [0], [0], [1], [0, 0, 1, 1], [], []>} : vector<8x72xf32>, vector<72x256xf32>, vector<8x256xf32> -> vector<8x256xf32>
    %cst_30 = arith.constant dense<0.000000e+00> : vector<8xf32>
    %64 = vector.multi_reduction <add>, %63, %cst_30 [1] : vector<8x256xf32> to vector<8xf32>
    %65 = vector.shape_cast %64 : vector<8xf32> to vector<8x1xf32>
    %cst_31 = arith.constant 3.906250e-03 : f32
    %66 = vector.broadcast %cst_31 : f32 to vector<8x1xf32>
    %67 = arith.mulf %65, %66 : vector<8x1xf32>
    %68 = arith.mulf %63, %63 : vector<8x256xf32>
    %cst_32 = arith.constant dense<0.000000e+00> : vector<8xf32>
    %69 = vector.multi_reduction <add>, %68, %cst_32 [1] : vector<8x256xf32> to vector<8xf32>
    %70 = vector.shape_cast %69 : vector<8xf32> to vector<8x1xf32>
    %cst_33 = arith.constant 3.906250e-03 : f32
    %71 = vector.broadcast %cst_33 : f32 to vector<8x1xf32>
    %72 = arith.mulf %70, %71 : vector<8x1xf32>
    %73 = arith.mulf %67, %67 : vector<8x1xf32>
    %74 = arith.subf %72, %73 : vector<8x1xf32>
    %cst_34 = arith.constant 9.99999974E-6 : f32
    %75 = vector.broadcast %cst_34 : f32 to vector<8x1xf32>
    %76 = arith.addf %74, %75 : vector<8x1xf32>
    %77 = math.rsqrt %76 : vector<8x1xf32>
    %78 = vector.broadcast %67 : vector<8x1xf32> to vector<8x256xf32>
    %79 = arith.subf %63, %78 : vector<8x256xf32>
    %80 = vector.broadcast %77 : vector<8x1xf32> to vector<8x256xf32>
    %81 = arith.mulf %79, %80 : vector<8x256xf32>
    %cst_35 = arith.constant 0.000000e+00 : f32
    %82 = vector.broadcast %cst_35 : f32 to vector<8x256xf32>
    %83 = arith.maximumf %81, %82 : vector<8x256xf32>
    %c16_i32_36 = arith.constant 16 : i32
    %84 = tpu.dynamic_rotate %83 by %c16_i32_36 dim 1 : vector<8x256xf32>, i32 -> vector<8x256xf32>
    %c0_i32_37 = arith.constant 0 : i32
    %85 = vector.broadcast %c0_i32_37 : i32 to vector<1x256xi32>
    %86 = arith.cmpi eq, %3, %85 : vector<1x256xi32>
    %c240_i32_38 = arith.constant 240 : i32
    %87 = tpu.dynamic_rotate %83 by %c240_i32_38 dim 1 : vector<8x256xf32>, i32 -> vector<8x256xf32>
    %88 = vector.shape_cast %86 : vector<1x256xi1> to vector<1x256xi1>
    %89 = vector.broadcast %88 : vector<1x256xi1> to vector<8x256xi1>
    %90 = arith.select %89, %87, %84 : vector<8x256xi1>, vector<8x256xf32>
    %c1_i32_39 = arith.constant 1 : i32
    %91 = tpu.dynamic_rotate %90 by %c1_i32_39 dim 1 : vector<8x256xf32>, i32 -> vector<8x256xf32>
    %c0_i32_40 = arith.constant 0 : i32
    %92 = vector.broadcast %c0_i32_40 : i32 to vector<1x256xi32>
    %93 = arith.cmpi eq, %4, %92 : vector<1x256xi32>
    %c255_i32_41 = arith.constant 255 : i32
    %94 = tpu.dynamic_rotate %90 by %c255_i32_41 dim 1 : vector<8x256xf32>, i32 -> vector<8x256xf32>
    %95 = vector.shape_cast %93 : vector<1x256xi1> to vector<1x256xi1>
    %96 = vector.broadcast %95 : vector<1x256xi1> to vector<8x256xi1>
    %97 = arith.select %96, %94, %91 : vector<8x256xi1>, vector<8x256xf32>
    %c0_42 = arith.constant 0 : index
    %c0_43 = arith.constant 0 : index
    %98 = vector.load %arg6[%c0_42, %c0_43] : memref<72x256xf32, #tpu.memory_space<vmem>>, vector<8x256xf32>
    tpu.vector_store %arg6[%c0_42, %c0_43], %97 {strides = array<i32>} : memref<72x256xf32, #tpu.memory_space<vmem>>, vector<8x256xf32>,
    %c8_44 = arith.constant 8 : index
    %c0_45 = arith.constant 0 : index
    %99 = vector.load %arg6[%c8_44, %c0_45] : memref<72x256xf32, #tpu.memory_space<vmem>>, vector<8x256xf32>
    tpu.vector_store %arg6[%c8_44, %c0_45], %90 {strides = array<i32>} : memref<72x256xf32, #tpu.memory_space<vmem>>, vector<8x256xf32>,
    %c15_i32_46 = arith.constant 15 : i32
    %100 = vector.broadcast %c15_i32_46 : i32 to vector<1x256xi32>
    %101 = arith.cmpi eq, %4, %100 : vector<1x256xi32>
    %102 = vector.shape_cast %101 : vector<1x256xi1> to vector<1x256xi1>
    %103 = vector.broadcast %102 : vector<1x256xi1> to vector<8x256xi1>
    %104 = arith.select %103, %91, %94 : vector<8x256xi1>, vector<8x256xf32>
    %c16_47 = arith.constant 16 : index
    %c0_48 = arith.constant 0 : index
    %105 = vector.load %arg6[%c16_47, %c0_48] : memref<72x256xf32, #tpu.memory_space<vmem>>, vector<8x256xf32>
    tpu.vector_store %arg6[%c16_47, %c0_48], %104 {strides = array<i32>} : memref<72x256xf32, #tpu.memory_space<vmem>>, vector<8x256xf32>,
    %c1_i32_49 = arith.constant 1 : i32
    %106 = tpu.dynamic_rotate %83 by %c1_i32_49 dim 1 : vector<8x256xf32>, i32 -> vector<8x256xf32>
    %c0_i32_50 = arith.constant 0 : i32
    %107 = vector.broadcast %c0_i32_50 : i32 to vector<1x256xi32>
    %108 = arith.cmpi eq, %4, %107 : vector<1x256xi32>
    %c255_i32_51 = arith.constant 255 : i32
    %109 = tpu.dynamic_rotate %83 by %c255_i32_51 dim 1 : vector<8x256xf32>, i32 -> vector<8x256xf32>
    %110 = vector.shape_cast %108 : vector<1x256xi1> to vector<1x256xi1>
    %111 = vector.broadcast %110 : vector<1x256xi1> to vector<8x256xi1>
    %112 = arith.select %111, %109, %106 : vector<8x256xi1>, vector<8x256xf32>
    %c24_52 = arith.constant 24 : index
    %c0_53 = arith.constant 0 : index
    %113 = vector.load %arg6[%c24_52, %c0_53] : memref<72x256xf32, #tpu.memory_space<vmem>>, vector<8x256xf32>
    tpu.vector_store %arg6[%c24_52, %c0_53], %112 {strides = array<i32>} : memref<72x256xf32, #tpu.memory_space<vmem>>, vector<8x256xf32>,
    %c32_54 = arith.constant 32 : index
    %c0_55 = arith.constant 0 : index
    %114 = vector.load %arg6[%c32_54, %c0_55] : memref<72x256xf32, #tpu.memory_space<vmem>>, vector<8x256xf32>
    tpu.vector_store %arg6[%c32_54, %c0_55], %83 {strides = array<i32>} : memref<72x256xf32, #tpu.memory_space<vmem>>, vector<8x256xf32>,
    %c15_i32_56 = arith.constant 15 : i32
    %115 = vector.broadcast %c15_i32_56 : i32 to vector<1x256xi32>
    %116 = arith.cmpi eq, %4, %115 : vector<1x256xi32>
    %117 = vector.shape_cast %116 : vector<1x256xi1> to vector<1x256xi1>
    %118 = vector.broadcast %117 : vector<1x256xi1> to vector<8x256xi1>
    %119 = arith.select %118, %106, %109 : vector<8x256xi1>, vector<8x256xf32>
    %c40_57 = arith.constant 40 : index
    %c0_58 = arith.constant 0 : index
    %120 = vector.load %arg6[%c40_57, %c0_58] : memref<72x256xf32, #tpu.memory_space<vmem>>, vector<8x256xf32>
    tpu.vector_store %arg6[%c40_57, %c0_58], %119 {strides = array<i32>} : memref<72x256xf32, #tpu.memory_space<vmem>>, vector<8x256xf32>,
    %c15_i32_59 = arith.constant 15 : i32
    %121 = vector.broadcast %c15_i32_59 : i32 to vector<1x256xi32>
    %122 = arith.cmpi eq, %3, %121 : vector<1x256xi32>
    %123 = vector.shape_cast %122 : vector<1x256xi1> to vector<1x256xi1>
    %124 = vector.broadcast %123 : vector<1x256xi1> to vector<8x256xi1>
    %125 = arith.select %124, %84, %87 : vector<8x256xi1>, vector<8x256xf32>
    %c1_i32_60 = arith.constant 1 : i32
    %126 = tpu.dynamic_rotate %125 by %c1_i32_60 dim 1 : vector<8x256xf32>, i32 -> vector<8x256xf32>
    %c0_i32_61 = arith.constant 0 : i32
    %127 = vector.broadcast %c0_i32_61 : i32 to vector<1x256xi32>
    %128 = arith.cmpi eq, %4, %127 : vector<1x256xi32>
    %c255_i32_62 = arith.constant 255 : i32
    %129 = tpu.dynamic_rotate %125 by %c255_i32_62 dim 1 : vector<8x256xf32>, i32 -> vector<8x256xf32>
    %130 = vector.shape_cast %128 : vector<1x256xi1> to vector<1x256xi1>
    %131 = vector.broadcast %130 : vector<1x256xi1> to vector<8x256xi1>
    %132 = arith.select %131, %129, %126 : vector<8x256xi1>, vector<8x256xf32>
    %c48_63 = arith.constant 48 : index
    %c0_64 = arith.constant 0 : index
    %133 = vector.load %arg6[%c48_63, %c0_64] : memref<72x256xf32, #tpu.memory_space<vmem>>, vector<8x256xf32>
    tpu.vector_store %arg6[%c48_63, %c0_64], %132 {strides = array<i32>} : memref<72x256xf32, #tpu.memory_space<vmem>>, vector<8x256xf32>,
    %c56_65 = arith.constant 56 : index
    %c0_66 = arith.constant 0 : index
    %134 = vector.load %arg6[%c56_65, %c0_66] : memref<72x256xf32, #tpu.memory_space<vmem>>, vector<8x256xf32>
    tpu.vector_store %arg6[%c56_65, %c0_66], %125 {strides = array<i32>} : memref<72x256xf32, #tpu.memory_space<vmem>>, vector<8x256xf32>,
    %c15_i32_67 = arith.constant 15 : i32
    %135 = vector.broadcast %c15_i32_67 : i32 to vector<1x256xi32>
    %136 = arith.cmpi eq, %4, %135 : vector<1x256xi32>
    %137 = vector.shape_cast %136 : vector<1x256xi1> to vector<1x256xi1>
    %138 = vector.broadcast %137 : vector<1x256xi1> to vector<8x256xi1>
    %139 = arith.select %138, %126, %129 : vector<8x256xi1>, vector<8x256xf32>
    %c64_68 = arith.constant 64 : index
    %c0_69 = arith.constant 0 : index
    %140 = vector.load %arg6[%c64_68, %c0_69] : memref<72x256xf32, #tpu.memory_space<vmem>>, vector<8x256xf32>
    tpu.vector_store %arg6[%c64_68, %c0_69], %139 {strides = array<i32>} : memref<72x256xf32, #tpu.memory_space<vmem>>, vector<8x256xf32>,
    %c0_70 = arith.constant 0 : index
    %c0_71 = arith.constant 0 : index
    %141 = vector.load %arg6[%c0_70, %c0_71] : memref<72x256xf32, #tpu.memory_space<vmem>>, vector<72x256xf32>
    %cst_72 = arith.constant dense<0.000000e+00> : vector<8x256xf32>
    %142 = tpu.matmul %2, %141, %cst_72 {dimension_numbers = #tpu.dot_dimension_numbers<[1], [0], [0], [1], [0, 0, 1, 1], [], []>} : vector<8x72xf32>, vector<72x256xf32>, vector<8x256xf32> -> vector<8x256xf32>
    %cst_73 = arith.constant dense<0.000000e+00> : vector<8xf32>
    %143 = vector.multi_reduction <add>, %142, %cst_73 [1] : vector<8x256xf32> to vector<8xf32>
    %144 = vector.shape_cast %143 : vector<8xf32> to vector<8x1xf32>
    %cst_74 = arith.constant 3.906250e-03 : f32
    %145 = vector.broadcast %cst_74 : f32 to vector<8x1xf32>
    %146 = arith.mulf %144, %145 : vector<8x1xf32>
    %147 = arith.mulf %142, %142 : vector<8x256xf32>
    %cst_75 = arith.constant dense<0.000000e+00> : vector<8xf32>
    %148 = vector.multi_reduction <add>, %147, %cst_75 [1] : vector<8x256xf32> to vector<8xf32>
    %149 = vector.shape_cast %148 : vector<8xf32> to vector<8x1xf32>
    %cst_76 = arith.constant 3.906250e-03 : f32
    %150 = vector.broadcast %cst_76 : f32 to vector<8x1xf32>
    %151 = arith.mulf %149, %150 : vector<8x1xf32>
    %152 = arith.mulf %146, %146 : vector<8x1xf32>
    %153 = arith.subf %151, %152 : vector<8x1xf32>
    %cst_77 = arith.constant 9.99999974E-6 : f32
    %154 = vector.broadcast %cst_77 : f32 to vector<8x1xf32>
    %155 = arith.addf %153, %154 : vector<8x1xf32>
    %156 = math.rsqrt %155 : vector<8x1xf32>
    %157 = vector.broadcast %146 : vector<8x1xf32> to vector<8x256xf32>
    %158 = arith.subf %142, %157 : vector<8x256xf32>
    %159 = vector.broadcast %156 : vector<8x1xf32> to vector<8x256xf32>
    %160 = arith.mulf %158, %159 : vector<8x256xf32>
    %161 = arith.addf %0, %160 : vector<8x256xf32>
    %c0_78 = arith.constant 0 : index
    %c0_79 = arith.constant 0 : index
    %162 = vector.load %arg5[%c0_78, %c0_79] : memref<8x256xf32, #tpu.memory_space<vmem>>, vector<8x256xf32>
    tpu.vector_store %arg5[%c0_78, %c0_79], %161 {strides = array<i32>} : memref<8x256xf32, #tpu.memory_space<vmem>>, vector<8x256xf32>,
    return
  }
  func.func @transform_0(%arg0: i32) -> (i32, i32) {
    %c0_i32 = arith.constant 0 : i32
    %c0_i32_0 = arith.constant 0 : i32
    return %c0_i32, %arg0 : i32, i32
  }
  func.func @transform_1(%arg0: i32) -> (i32, i32) {
    %c0_i32 = arith.constant 0 : i32
    %c0_i32_0 = arith.constant 0 : i32
    %c0_i32_1 = arith.constant 0 : i32
    return %c0_i32, %c0_i32_0 : i32, i32
  }
  func.func @transform_2(%arg0: i32) -> (i32, i32) {
    %c0_i32 = arith.constant 0 : i32
    %c0_i32_0 = arith.constant 0 : i32
    %c0_i32_1 = arith.constant 0 : i32
    return %c0_i32, %c0_i32_0 : i32, i32
  }
  func.func @transform_3(%arg0: i32) -> (i32, i32) {
    %c0_i32 = arith.constant 0 : i32
    %c0_i32_0 = arith.constant 0 : i32
    %c0_i32_1 = arith.constant 0 : i32
    return %c0_i32, %c0_i32_0 : i32, i32
  }
  func.func @transform_4(%arg0: i32) -> (i32, i32) {
    %c0_i32 = arith.constant 0 : i32
    %c0_i32_0 = arith.constant 0 : i32
    return %c0_i32, %arg0 : i32, i32
  }
}

</mosaic_0001>

<bundles_post_ra>
// kernel: tpu_custom_call.1
= control target key start
LH: loop header
LB: loop body
LE: loop exit
PB: predicated region body
PF: predicated region fallthrough
CT: control target
= control target key end

     0   :  { %9 = vsyncpa [#allocation4], 0  ;;  %s1633_s0 = inlined_call_operand.hbm [shape: f32[8,512], index: 0, kind: input, shape index: {}]   ;;  %s1634_s1 = inlined_call_operand.hbm [shape: s32[2,256], index: 1, kind: input, shape index: {}]   ;;  %s1635_s2 = inlined_call_operand.hbm [shape: f32[8,72], index: 2, kind: input, shape index: {}]   ;;  %s1636_s3 = inlined_call_operand.vmem [shape: f32[8,72], index: 3, kind: input, shape index: {}]   ;;  %s1637_s4 = inlined_call_operand.hbm [shape: f32[8,512], index: 4, kind: output, shape index: {}]  }
   0x1   :  { %11 = vsyncpa [#allocation4 + $0x1], 0 }
   0x2   :  { %12 = vsyncpa [#allocation7], 0 }
   0x3   :  { %13 = vsyncpa [#allocation5], 0 }
   0x4   :  { %15 = vsyncpa [#allocation5 + $0x1], 0  ;;  %s1161_s15 = smov 0   ;;  %s1163_s16 = smov 0  }
   0x5   :  { %s1165_s17 = smov 0   ;;  %s1167_s18 = smov 0  }
   0x6 LB: > { %s1182_s19 = sadd.s32 4294967295, %s1124_s18   ;;  %s797_s20 = sadd.s32 4294967294, %s1124_s18   ;;  %s1124_s18 = sphi %s1167_s18, %s1673_s18   ;;  %s1120_s17 = sphi %s1165_s17, %s1672_s17   ;;  %s1116_s16 = sphi %s1163_s16, %s1671_s16   ;;  %s1112_s15 = sphi %s1161_s15, %s1670_s15  }
   0x7   : > { %p41_p0 = scmp.ne.s32.totalorder %s1116_s16, %s1112_s15  ;;  %p1638_p1 = scmp.eq.s32.totalorder %s1182_s19, 0 }
   0x8   : > { %p134_p3 = scmp.eq.s32.totalorder %s797_s20, 1  ;;  %p798_p5 = scmp.ge.s32.totalorder %s1124_s18, 1 }
   0x9   : > { %p1191_p4 = por %p1638_p1, %p41_p0  ;;  %p141_p7 = scmp.lt.s32.totalorder %s1124_s18, 3 }
   0xa   : > { %p1196_p6 = por %p134_p3, %p41_p0  ;;  %s1126_s24 = smov [#allocation6]  }
   0xb   : > { %s1641_s21 = scalar_select %p1191_p4, 1, 0 }
   0xc   : > { %s1642_s22 = scalar_select %p1196_p6, 1, 0 }
   0xd   : > { %p1201_p8 = pnand %p798_p5, %p141_p7  ;;  %s154_s25 = sshll.u32 %s1126_s24, 4  ;;  %s155_s25 = int_to_ptr.vmem [resolvable:$true] %s154_s25 }
   0xe   : > { %s1127_s26 = smov [#allocation8]   ;;  %s1217_s29 = sadd.s32 1, %s1124_s18  }
   0xf   : > { %s1643_s23 = scalar_select %p1201_p8, 1, 0 }
  0x10   : > { %p863_p10 = pneg %p1201_p8  ;;  %s165_s27 = sshll.u32 %s1127_s26, 4  ;;  %s1214_s27 = int_to_ptr.vmem [resolvable:$true] %s165_s27 }
  0x11   : > { %s25_s30 = ssub.s32 %s1124_s18, %s1217_s29  ;;  %s968_s7 = scalar_lea.hbm %s1634_s1, 64 }
  0x12   : > { %p1210_p11 = pnand %p863_p10, %p1638_p1  ;;  %p969_p12 = scmp.ne.s32.totalorder %s1634_s1, %s968_s7 }
  0x13   : > { %p975_p5 = scmp.lt.u32.totalorder %s968_s7, %s1634_s1 }
  0x14   : > { %p970_p13 = pneg %p1210_p11 }
  0x16   : > { %p971_p0 = pnand %p970_p13, %p969_p12 }
  0x18   : > { %p972_p3 = pneg %p971_p0 }
  0x1a   : > { %p977_p7 = pnand %p975_p5, %p972_p3 }
  0x1c   : > { %980 = shalt.err (!%p977_p7)
}
  0x1d   : > { %s981_s12 = scalar_lea.vmem %s155_s25, 64  ;;  %p989_p2 = scmp.lt.s32.totalorder %s155_s25, %s155_s25 }
  0x1e   : > { %p982_p10 = scmp.ne.s32.totalorder %s155_s25, %s981_s12  ;;  %p990_p6 = scmp.lt.s32.totalorder %s981_s12, %s981_s12 }
  0x20   : > { %p984_p9 = pnand %p982_p10, %p970_p13  ;;  %p991_p4 = por %p990_p6, %p989_p2 }
  0x22   : > { %p985_p1 = pneg %p984_p9 }
  0x24   : > { %p992_p8 = pnand %p991_p4, %p985_p1 }
  0x26   : > { %995 = shalt.err (!%p992_p8)
}
  0x27   : > { %866 = dma.hbm_to_vmem [thread:$0]  (!%p1210_p11), %s1634_s1, 64, %s155_s25, [#allocation7]  }
  0x28   : > { %s996_s26 = scalar_lea.hbm %s1635_s2, 128 }
  0x29   : > { %p997_p9 = scmp.ne.s32.totalorder %s1635_s2, %s996_s26  ;;  %p1003_p4 = scmp.lt.u32.totalorder %s996_s26, %s1635_s2 }
  0x2b   : > { %p999_p2 = pnand %p997_p9, %p970_p13 }
  0x2d   : > { %p1000_p1 = pneg %p999_p2 }
  0x2f   : > { %p1005_p6 = pnand %p1003_p4, %p1000_p1 }
  0x31   : > { %1008 = shalt.err (!%p1005_p6)
}
  0x32   : > { %s1009_s25 = scalar_lea.vmem %s1214_s27, 128  ;;  %p1017_p3 = scmp.lt.s32.totalorder %s1214_s27, %s1214_s27 }
  0x33   : > { %p1010_p8 = scmp.ne.s32.totalorder %s1214_s27, %s1009_s25  ;;  %p1018_p5 = scmp.lt.s32.totalorder %s1009_s25, %s1009_s25 }
  0x35   : > { %p1012_p12 = pnand %p1010_p8, %p970_p13  ;;  %p1019_p7 = por %p1018_p5, %p1017_p3 }
  0x37   : > { %p1013_p0 = pneg %p1012_p12 }
  0x39   : > { %p1020_p10 = pnand %p1019_p7, %p1013_p0 }
  0x3b   : > { %1023 = shalt.err (!%p1020_p10)
}
  0x3c   : > { %869 = dma.hbm_to_vmem [thread:$0]  (!%p1210_p11), %s1635_s2, 128, %s1214_s27, [#allocation7]  }
  0x3d   : > { %p26_p13 = scmp.eq.s32.totalorder %s25_s30, 0  ;;  %s28_s11 = sadd.s32 1, %s1120_s17 }
  0x3e   : > { %p35_p9 = scmp.ne.s32.totalorder %s1120_s17, %s1116_s16  ;;  %p36_p2 = scmp.eq.s32.totalorder %s1124_s18, 0 }
  0x3f   : > { %s1276_s28 = scalar_select %p26_p13, %s1120_s17, %s28_s11  }
  0x40   : > { %p37_p1 = por %p36_p2, %p35_p9  ;;  %p1645_p4 = scmp.eq.s32.totalorder %s1182_s19, 1 }
  0x41   : > { %p880_p8 = scmp.lt.s32.totalorder %s1124_s18, 2  ;;  %s179_s13 = sand.u32 1, %s1120_s17  }
  0x42   : > { %p1280_p6 = por %p1645_p4, %p35_p9  ;;  %s802_s14 = sshll.u32 %s179_s13, 4 }
  0x43   : > { %s817_s20 = sshll.u32 %s1124_s18, 8  ;;  %s183_s30 = scalar_lea.vmem [#allocation3], %s802_s14 }
  0x44   : > { %s1290_s27 = scalar_lea.hbm %s1633_s0, %s817_s20  ;;  %s191_s5 = sshll.u32 %s183_s30, 4  ;;  %s1292_s5 = int_to_ptr.vmem [resolvable:$true] %s191_s5 }
  0x45   : > { %p1294_p11 = pnand %p880_p8, %p37_p1  ;;  %s180_s7 = scalar_lea.sflag [#allocation4], %s179_s13 }
  0x46   : > { %s1024_s8 = scalar_lea.hbm %s1290_s27, 256  ;;  %s1029_s10 = scalar_lea.hbm %s1633_s0, 512 }
  0x47   : > { %p1025_p12 = scmp.ne.s32.totalorder %s1290_s27, %s1024_s8  ;;  %p1026_p0 = pneg %p1294_p11 }
  0x48   : > { %p1030_p7 = scmp.lt.u32.totalorder %s1290_s27, %s1633_s0  ;;  %p1031_p10 = scmp.lt.u32.totalorder %s1029_s10, %s1024_s8 }
  0x49   : > { %p1027_p3 = pnand %p1026_p0, %p1025_p12  ;;  %p1033_p9 = scmp.lt.u32.totalorder %s1024_s8, %s1290_s27 }
  0x4a   : > { %p1032_p13 = por %p1031_p10, %p1030_p7 }
  0x4b   : > { %p1028_p5 = pneg %p1027_p3 }
  0x4c   : > { %p1034_p2 = por %p1033_p9, %p1032_p13 }
  0x4e   : > { %p1035_p1 = pnand %p1034_p2, %p1028_p5 }
  0x50   : > { %1038 = shalt.err (!%p1035_p1)
}
  0x51   : > { %s1039_s13 = scalar_lea.vmem %s1292_s5, 256  ;;  %s1128_s20 = smov [#allocation3]  }
  0x52   : > { %p1040_p4 = scmp.ne.s32.totalorder %s1292_s5, %s1039_s13  ;;  %s1044_s24 = sshll.u32 %s1128_s20, 4  ;;  %s1045_s24 = int_to_ptr.vmem [resolvable:$false] %s1044_s24 }
  0x53   : > { %s1046_s26 = scalar_lea.vmem %s1045_s24, 512  ;;  %p1047_p3 = scmp.lt.s32.totalorder %s1292_s5, %s1045_s24 }
  0x54   : > { %p1042_p8 = pnand %p1040_p4, %p1026_p0  ;;  %p1048_p7 = scmp.lt.s32.totalorder %s1046_s26, %s1039_s13 }
  0x56   : > { %p1043_p12 = pneg %p1042_p8  ;;  %p1049_p10 = por %p1048_p7, %p1047_p3 }
  0x58   : > { %p1050_p13 = pnand %p1049_p10, %p1043_p12 }
  0x5a   : > { %1053 = shalt.err (!%p1050_p13)
}
  0x5b   : > { %873 = dma.hbm_to_vmem [thread:$0]  (!%p1294_p11), %s1290_s27, 256, %s1292_s5, %s180_s7  }
  0x5c   : > { %p1648_p5 = scmp.ne.s32.totalorder %s1643_s23, 0 }
  0x5d   : > { %s1326_s30 = sand.u32 (!%p1648_p5), 1, %s1116_s16   ;;  %p1649_p0 = scmp.ne.s32.totalorder (!%p1648_p5), %s1641_s21, 0 }
  0x5e   : > { %200 = sbr.rel (%p1648_p5) target bundleno = 1406 (0x57e), region = 36  ;;  %s806_s8 = sshll.u32 (!%p1648_p5), %s1326_s30, 4 }
  0x5f   : > { %s203_s25 = scalar_lea.sflag (!%p1648_p5), [#allocation4], %s1326_s30  ;;  %s206_s9 = scalar_lea.vmem (!%p1648_p5), [#allocation3], %s806_s8 }
  0x65   : > { %1099 = dma.done.wait (%p1649_p0), %s203_s25, 256  }
  0x66   : > { %1101 = vsyncadd (%p1649_p0), %s203_s25, 4294967040  ;;  %p1650_p11 = scmp.eq.s32.totalorder %s1182_s19, 0 }
  0x68   : > { %1103 = dma.done.wait (%p1650_p11), [#allocation7], 192   ;;  %p1651_p9 = pmov %p1650_p11 }
  0x69   : > { %v1340_v0 = vld [vmem:[%s206_s9] sm:$0xff]  ;;  %s1129_s23 = smov 112   ;;  %s1130_s27 = smov 16   ;;  %v1346_v1 = vld [vmem:[%s206_s9 + $0x8] sm:$0xff]  ;;  %v252_v2 = vlaneseq  ;;  %v1131_v7 = vmov 0   ;;  %v1134_v33 = vmov 0.0  }
  0x6a   : > { %1105 = vsyncadd (%p1651_p9), [#allocation7], 4294967104  ;;  %258 = vrot.lane.b32.xlu1 %v1340_v0, %s1129_s23  ;;  %248 = vrot.lane.b32.xlu0 %v1340_v0, %s1130_s27  ;;  %v245_v3 = vld [vmem:[#allocation6] ss:$2 sm:$0x3]  ;;  %v939_v26 = vpack.i.bf16 %v1346_v1, %v1340_v0  ;;  %s1132_s21 = smov 127  }
  0x6b   : > { %v267_v4 = vshrl.u32 %v252_v2, 7  ;;  %vm257_vm0 = vcmp.eq.s32.totalorder %v245_v3, 0  ;;  %v1356_v9 = vand.u32 127, %v252_v2  ;;  %vm348_vm5 = vcmp.eq.s32.totalorder %v245_v3, 15  ;;  %s1133_s5 = smov 1   ;;  %470 = vmatprep.mubr.f32.mxu0 %v1134_v33  ;;  %664 = vmatprep.mubr.f32.mxu1 %v1134_v33  ;;  %v244_v41 = vld [vmem:[%s1636_s3] sm:$0xff] }
  0x6c   : > { %v265_v8 = vsel %vm257_vm0, 1, %v1131_v7  ;;  %v349_v24 = vsel %vm348_vm5, 1, %v1131_v7  ;;  %v247_v34 = vld [vmem:[#allocation6 + $0x1] ss:$2 sm:$0x3]  ;;  %vm402_vm0 = vcmask 588800  }
  0x6d   : > { %v1352_v5 = vsub.s32 0, %v267_v4  ;;  %v1354_v6 = vsub.s32 1, %v267_v4  ;;  %vm262_vm1 = vcmp.lt.s32.totalorder %v1356_v9, 112  ;;  %vm254_vm2 = vcmp.lt.s32.totalorder %v1356_v9, 16  ;;  %s818_s10 = sshll.u32 %s1182_s19, 8  ;;  %s238_s11 = scalar_lea.vmem [#allocation9], %s806_s8 }
  0x6e   : > { %260 = vrot.lane.b32.xlu1 %v1346_v1, %s1129_s23  ;;  %250 = vrot.lane.b32.xlu0 %v1346_v1, %s1130_s27  ;;  %vm285_vm8 = vcmp.eq.s32.totalorder %v247_v34, 0  ;;  %vm310_vm9 = vcmp.eq.s32.totalorder %v247_v34, 15  ;;  %vm282_vm10 = vcmp.lt.s32.totalorder %v1356_v9, 1  ;;  %vm290_vm11 = vcmp.lt.s32.totalorder %v1356_v9, 127  ;;  %s708_s14 = sshll.u32 %s238_s11, 4  ;;  %s1589_s24 = scalar_lea.hbm %s1637_s4, %s818_s10  ;;  %s1591_s14 = int_to_ptr.vmem [resolvable:$true] %s708_s14 }
  0x6f   : > { %v269_v10 = vrot.slane %v265_v8, %v1352_v5  ;;  %v273_v11 = vrot.slane %v265_v8, %v1354_v6  ;;  %v357_v27 = vrot.slane %v349_v24, %v1354_v6  ;;  %v353_v28 = vrot.slane %v349_v24, %v1352_v5  ;;  %s694_s19 = scalar_lea.sflag [#allocation5], %s1326_s30  ;;  %s1054_s26 = scalar_lea.vmem %s1591_s14, 256 }
  0x70   : > { %v293_v35 = vsel %vm285_vm8, 1, %v1131_v7  ;;  %v311_v38 = vsel %vm310_vm9, 1, %v1131_v7  ;;  %p1055_p2 = scmp.ne.s32.totalorder %s1591_s14, %s1054_s26  ;;  %s1135_s8 = smov [#allocation9]  }
  0x71   : > { %vm1362_vm3 = vcmp.eq.s32.totalorder %v269_v10, 1  ;;  %vm1366_vm4 = vcmp.eq.s32.totalorder %v273_v11, 1  ;;  %vm1390_vm6 = vcmp.eq.s32.totalorder %v357_v27, 1  ;;  %vm1394_vm7 = vcmp.eq.s32.totalorder %v353_v28, 1  ;;  %s1058_s25 = sshll.u32 %s1135_s8, 4  ;;  %s1059_s25 = int_to_ptr.vmem [resolvable:$false] %s1058_s25 }
  0x72   : > { %v301_v36 = vrot.slane %v293_v35, %v1354_v6  ;;  %v297_v37 = vrot.slane %v293_v35, %v1352_v5  ;;  %v319_v43 = vrot.slane %v311_v38, %v1354_v6  ;;  %v315_v44 = vrot.slane %v311_v38, %v1352_v5  ;;  %p1056_p1 = pnand %p1055_p2, %p1280_p6  ;;  %s1060_s9 = scalar_lea.vmem %s1059_s25, 512 }
  0x73   : > { %p1061_p8 = scmp.lt.s32.totalorder %s1591_s14, %s1059_s25  ;;  %p1062_p12 = scmp.lt.s32.totalorder %s1060_s9, %s1054_s26 }
  0x74   : > { %vm1418_vm12 = vcmp.eq.s32.totalorder %v301_v36, 1  ;;  %vm1422_vm13 = vcmp.eq.s32.totalorder %v297_v37, 1  ;;  %vm1440_vm14 = vcmp.eq.s32.totalorder %v319_v43, 1  ;;  %vm1444_vm15 = vcmp.eq.s32.totalorder %v315_v44, 1  ;;  %v243_v37 = vld [vmem:[#allocation8] sm:$0xff]  ;;  %p1057_p4 = pneg %p1056_p1 }
  0x75   : > { %p1063_p3 = por %p1062_p12, %p1061_p8 }
  0x77   : > { %p1064_p7 = pnand %p1063_p3, %p1057_p4 }
  0xdc   : > { %v259_v12 = vpop.permute.xlu1 %258  ;;  %v249_v13 = vpop.permute.xlu0 %248 }
  0xe0   : > { %v261_v16 = vpop.permute.xlu1 %260  ;;  %v251_v17 = vpop.permute.xlu0 %250 }
  0xe1   : > { %v263_v18 = vsel %vm262_vm1, %v259_v12, %v261_v16  ;;  %v264_v19 = vsel %vm262_vm1, %v261_v16, %v259_v12  ;;  %v255_v20 = vsel %vm254_vm2, %v249_v13, %v251_v17  ;;  %v256_v21 = vsel %vm254_vm2, %v251_v17, %v249_v13 }
  0xe2   : > { %v276_v22 = vsel %vm1362_vm3, %v263_v18, %v256_v21  ;;  %v277_v23 = vsel %vm1366_vm4, %v264_v19, %v255_v20  ;;  %v1400_v31 = vsel %vm1390_vm6, %v255_v20, %v264_v19  ;;  %v1404_v32 = vsel %vm1394_vm7, %v256_v21, %v263_v18 }
  0xe3   : > { %v934_v25 = vpack.i.bf16 %v277_v23, %v276_v22 }
  0xe5   : > { %935 = vrot.lane.b32.xlu1 %v934_v25, %s1132_s21  ;;  %925 = vrot.lane.b32.xlu0 %v934_v25, %s1133_s5 }
  0xe9   : > { %940 = vrot.lane.b32.xlu1 %v939_v26, %s1132_s21  ;;  %930 = vrot.lane.b32.xlu0 %v939_v26, %s1133_s5 }
  0xed   : > { %364 = vrot.lane.b32.xlu1 %v1400_v31, %s1133_s5  ;;  %362 = vrot.lane.b32.xlu0 %v1404_v32, %s1133_s5 }
  0xf1   : > { %370 = vrot.lane.b32.xlu1 %v1400_v31, %s1132_s21  ;;  %368 = vrot.lane.b32.xlu0 %v1404_v32, %s1132_s21 }
 0x157   : > { %v936_v39 = vpop.permute.xlu1 %935  ;;  %v926_v40 = vpop.permute.xlu0 %925 }
 0x158   : > { %v938_v45 = vunpack.i.h.bf16 %v936_v39  ;;  %v937_v46 = vunpack.i.l.bf16 %v936_v39  ;;  %v928_v47 = vunpack.i.h.bf16 %v926_v40  ;;  %v927_v48 = vunpack.i.l.bf16 %v926_v40 }
 0x15a   : > { %v283_v49 = vsel %vm282_vm10, %v927_v48, %v928_v47  ;;  %v292_v50 = vsel %vm290_vm11, %v938_v45, %v937_v46  ;;  %v284_v51 = vsel %vm282_vm10, %v928_v47, %v927_v48  ;;  %v291_v52 = vsel %vm290_vm11, %v937_v46, %v938_v45 }
 0x15b   : > { %v941_v53 = vpop.permute.xlu1 %940  ;;  %v931_v54 = vpop.permute.xlu0 %930  ;;  %v305_v55 = vsel %vm1418_vm12, %v292_v50, %v283_v49  ;;  %v304_v56 = vsel %vm1422_vm13, %v291_v52, %v284_v51  ;;  %v323_v10 = vsel %vm1440_vm14, %v283_v49, %v292_v50  ;;  %v322_v12 = vsel %vm1444_vm15, %v284_v51, %v291_v52 }
 0x15c   : > { %v943_v59 = vunpack.i.h.bf16 %v941_v53  ;;  %v942_v60 = vunpack.i.l.bf16 %v941_v53  ;;  %v933_v61 = vunpack.i.h.bf16 %v931_v54  ;;  %v932_v62 = vunpack.i.l.bf16 %v931_v54 }
 0x15d   : > { %v819_v63 = vpack.c.bf16 %v277_v23, %v305_v55  ;;  %v821_v2 = vpack.c.bf16 %v276_v22, %v304_v56 }
 0x15e   : > { %v336_v3 = vsel %vm290_vm11, %v942_v60, %v943_v59  ;;  %v337_v4 = vsel %vm290_vm11, %v943_v59, %v942_v60  ;;  %v330_v5 = vsel %vm282_vm10, %v932_v62, %v933_v61  ;;  %v331_v6 = vsel %vm282_vm10, %v933_v61, %v932_v62 }
 0x15f   : > { %820 = vmatprep.subr.bf16.mxu0 %v819_v63  ;;  %v365_v7 = vpop.permute.xlu1 %364  ;;  %v363_v8 = vpop.permute.xlu0 %362  ;;  %v339_v11 = vsel %vm1418_vm12, %v337_v4, %v330_v5  ;;  %v338_v13 = vsel %vm1422_vm13, %v336_v3, %v331_v6  ;;  %v345_v18 = vsel %vm1440_vm14, %v330_v5, %v337_v4  ;;  %v344_v22 = vsel %vm1444_vm15, %v331_v6, %v336_v3 }
 0x160   : > { %822 = vmatpush1.bf16.msra.mxu0 %v821_v2  ;;  %v823_v16 = vpack.c.bf16 %v339_v11, %v323_v10  ;;  %v825_v17 = vpack.c.bf16 %v338_v13, %v322_v12  ;;  %v827_v21 = vpack.c.bf16 %v345_v18, %v1346_v1  ;;  %v366_v23 = vsel %vm282_vm10, %v363_v8, %v365_v7 }
 0x161   : > { %v367_v27 = vsel %vm282_vm10, %v365_v7, %v363_v8  ;;  %v829_v28 = vpack.c.bf16 %v344_v22, %v1340_v0 }
 0x162   : > { %824 = vmatprep.subr.bf16.mxu0 %v823_v16 }
 0x163   : > { %v371_v19 = vpop.permute.xlu1 %370  ;;  %v369_v20 = vpop.permute.xlu0 %368 }
 0x164   : > { %v372_v24 = vsel %vm290_vm11, %v369_v20, %v371_v19  ;;  %v373_v25 = vsel %vm290_vm11, %v371_v19, %v369_v20  ;;  %826 = vmatpush1.bf16.msra.mxu0 %v825_v17 }
 0x165   : > { %v375_v26 = vsel %vm1418_vm12, %v373_v25, %v366_v23  ;;  %828 = vmatprep.subr.bf16.mxu0 %v827_v21  ;;  %v374_v34 = vsel %vm1422_vm13, %v372_v24, %v367_v27  ;;  %v381_v36 = vsel %vm1440_vm14, %v366_v23, %v373_v25  ;;  %v380_v38 = vsel %vm1444_vm15, %v367_v27, %v372_v24 }
 0x166   : > { %v831_v33 = vpack.c.bf16 %v1400_v31, %v375_v26  ;;  %v833_v35 = vpack.c.bf16 %v1404_v32, %v374_v34 }
 0x168   : > { %830 = vmatpush1.bf16.msra.mxu0 %v829_v28 }
 0x169   : > { %832 = vmatprep.subr.bf16.mxu0 %v831_v33 }
 0x16c   : > { %834 = vmatpush1.bf16.msra.mxu0 %v833_v35 }
 0x16d   : > { %422 = vmatprep.subr.mxu0 %v381_v36 }
 0x170   : > { %423 = vmatpush1.msra.mxu0 %v380_v38 }
 0x171   : > { %810 = vmatmul.mubr.msk.f32.vlgmr.msra.gmra.mrb[0].mxu0 %vm402_vm0, %v243_v37 }
 0x244   : > { %v472_v31 = vpop.f32.mrb[0].mxu0 }
 0x245   : > { %v474_v39 = vpop.f32.mrb[1].mxu0  ;;  %v481_v40 = vmul.f32 %v472_v31, %v472_v31 }
 0x246   : > { %v482_v43 = vmul.f32 %v474_v39, %v474_v39  ;;  %v477_v44 = vadd.f32 %v474_v39, %v472_v31 }
 0x248   : > { %478 = vadd.xlane.f32.xlu0 %v477_v44  ;;  %v483_v32 = vadd.f32 %v482_v43, %v481_v40 }
 0x24a   : > { %484 = vadd.xlane.f32.xlu1 %v483_v32 }
 0x2d5   : > { %v479_v45 = vpop.xlane.xlu0 %478 }
 0x2d6   : > { %v480_v46 = vmul.f32 0.00390625, %v479_v45 }
 0x2d7   : > { %v485_v47 = vpop.xlane.xlu1 %484 }
 0x2d8   : > { %v486_v48 = vmul.f32 0.00390625, %v485_v47  ;;  %v487_v49 = vmul.f32 %v480_v46, %v480_v46  ;;  %v491_v52 = vsub.f32 %v472_v31, %v480_v46  ;;  %v492_v53 = vsub.f32 %v474_v39, %v480_v46 }
 0x2da   : > { %v488_v50 = vsub.f32 %v486_v48, %v487_v49 }
 0x2dc   : > { %v489_v51 = vadd.f32 1e-05, %v488_v50 }
 0x2de   : > { %964 = vrsqrt.f32 %v489_v51 }
 0x2e8   : > { %v965_v54 = vpop.eup %964 }
 0x2e9   : > { %v494_v55 = vmul.f32 %v965_v54, %v492_v53  ;;  %v493_v56 = vmul.f32 %v965_v54, %v491_v52 }
 0x2eb   : > { %v1489_v59 = vmax.f32 %v494_v55, 0.0  ;;  %v1491_v60 = vmax.f32 %v493_v56, 0.0 }
 0x2ed   : > { %499 = vrot.lane.b32.xlu1 %v1489_v59, %s1130_s27  ;;  %497 = vrot.lane.b32.xlu0 %v1491_v60, %s1130_s27  ;;  %v959_v11 = vpack.i.bf16 %v1489_v59, %v1491_v60 }
 0x2f1   : > { %505 = vrot.lane.b32.xlu1 %v1489_v59, %s1129_s23  ;;  %503 = vrot.lane.b32.xlu0 %v1491_v60, %s1129_s23 }
 0x35f   : > { %v500_v61 = vpop.permute.xlu1 %499  ;;  %v498_v62 = vpop.permute.xlu0 %497 }
 0x360   : > { %v501_v3 = vsel %vm254_vm2, %v498_v62, %v500_v61  ;;  %v502_v4 = vsel %vm254_vm2, %v500_v61, %v498_v62 }
 0x363   : > { %v506_v63 = vpop.permute.xlu1 %505  ;;  %v504_v2 = vpop.permute.xlu0 %503 }
 0x364   : > { %v507_v5 = vsel %vm262_vm1, %v504_v2, %v506_v63  ;;  %v508_v6 = vsel %vm262_vm1, %v506_v63, %v504_v2 }
 0x365   : > { %v509_v7 = vsel %vm1362_vm3, %v507_v5, %v502_v4  ;;  %v510_v8 = vsel %vm1366_vm4, %v508_v6, %v501_v3  ;;  %v556_v12 = vsel %vm1390_vm6, %v501_v3, %v508_v6  ;;  %v555_v14 = vsel %vm1394_vm7, %v502_v4, %v507_v5 }
 0x366   : > { %v954_v10 = vpack.i.bf16 %v510_v8, %v509_v7 }
 0x368   : > { %955 = vrot.lane.b32.xlu1 %v954_v10, %s1132_s21  ;;  %945 = vrot.lane.b32.xlu0 %v954_v10, %s1133_s5 }
 0x36c   : > { %960 = vrot.lane.b32.xlu1 %v959_v11, %s1132_s21  ;;  %950 = vrot.lane.b32.xlu0 %v959_v11, %s1133_s5 }
 0x370   : > { %559 = vrot.lane.b32.xlu1 %v556_v12, %s1133_s5  ;;  %557 = vrot.lane.b32.xlu0 %v555_v14, %s1133_s5 }
 0x374   : > { %565 = vrot.lane.b32.xlu1 %v556_v12, %s1132_s21  ;;  %563 = vrot.lane.b32.xlu0 %v555_v14, %s1132_s21 }
 0x3da   : > { %v956_v15 = vpop.permute.xlu1 %955  ;;  %v946_v13 = vpop.permute.xlu0 %945 }
 0x3db   : > { %v958_v16 = vunpack.i.h.bf16 %v956_v15  ;;  %v957_v17 = vunpack.i.l.bf16 %v956_v15  ;;  %v948_v18 = vunpack.i.h.bf16 %v946_v13  ;;  %v947_v19 = vunpack.i.l.bf16 %v946_v13 }
 0x3dd   : > { %v515_v29 = vsel %vm282_vm10, %v947_v19, %v948_v18  ;;  %v522_v30 = vsel %vm290_vm11, %v958_v16, %v957_v17  ;;  %v516_v20 = vsel %vm282_vm10, %v948_v18, %v947_v19  ;;  %v521_v21 = vsel %vm290_vm11, %v957_v17, %v958_v16 }
 0x3de   : > { %v961_v22 = vpop.permute.xlu1 %960  ;;  %v951_v23 = vpop.permute.xlu0 %950  ;;  %v524_v24 = vsel %vm1418_vm12, %v522_v30, %v515_v29  ;;  %v523_v25 = vsel %vm1422_vm13, %v521_v21, %v516_v20  ;;  %v530_v43 = vsel %vm1440_vm14, %v515_v29, %v522_v30  ;;  %v529_v32 = vsel %vm1444_vm15, %v516_v20, %v521_v21 }
 0x3df   : > { %v963_v26 = vunpack.i.h.bf16 %v961_v22  ;;  %v962_v27 = vunpack.i.l.bf16 %v961_v22  ;;  %v953_v28 = vunpack.i.h.bf16 %v951_v23  ;;  %v952_v33 = vunpack.i.l.bf16 %v951_v23 }
 0x3e0   : > { %v835_v34 = vpack.c.bf16 %v510_v8, %v524_v24  ;;  %v837_v35 = vpack.c.bf16 %v509_v7, %v523_v25 }
 0x3e1   : > { %v543_v36 = vsel %vm290_vm11, %v962_v27, %v963_v26  ;;  %v544_v37 = vsel %vm290_vm11, %v963_v26, %v962_v27  ;;  %v537_v38 = vsel %vm282_vm10, %v952_v33, %v953_v28  ;;  %v538_v31 = vsel %vm282_vm10, %v953_v28, %v952_v33 }
 0x3e2   : > { %836 = vmatprep.subr.bf16.mxu1 %v835_v34  ;;  %v560_v39 = vpop.permute.xlu1 %559  ;;  %v558_v40 = vpop.permute.xlu0 %557  ;;  %v546_v44 = vsel %vm1418_vm12, %v544_v37, %v537_v38  ;;  %v545_v45 = vsel %vm1422_vm13, %v543_v36, %v538_v31  ;;  %v552_v48 = vsel %vm1440_vm14, %v537_v38, %v544_v37  ;;  %v551_v52 = vsel %vm1444_vm15, %v538_v31, %v543_v36 }
 0x3e3   : > { %838 = vmatpush1.bf16.msra.mxu1 %v837_v35  ;;  %v839_v46 = vpack.c.bf16 %v546_v44, %v530_v43  ;;  %v841_v47 = vpack.c.bf16 %v545_v45, %v529_v32  ;;  %v843_v51 = vpack.c.bf16 %v552_v48, %v1489_v59  ;;  %v561_v53 = vsel %vm282_vm10, %v558_v40, %v560_v39 }
 0x3e4   : > { %v562_v59 = vsel %vm282_vm10, %v560_v39, %v558_v40  ;;  %v845_v61 = vpack.c.bf16 %v551_v52, %v1491_v60 }
 0x3e5   : > { %840 = vmatprep.subr.bf16.mxu1 %v839_v46 }
 0x3e6   : > { %v566_v49 = vpop.permute.xlu1 %565  ;;  %v564_v50 = vpop.permute.xlu0 %563 }
 0x3e7   : > { %v567_v54 = vsel %vm290_vm11, %v564_v50, %v566_v49  ;;  %v568_v55 = vsel %vm290_vm11, %v566_v49, %v564_v50  ;;  %842 = vmatpush1.bf16.msra.mxu1 %v841_v47 }
 0x3e8   : > { %v570_v56 = vsel %vm1418_vm12, %v568_v55, %v561_v53  ;;  %844 = vmatprep.subr.bf16.mxu1 %v843_v51  ;;  %v569_v63 = vsel %vm1422_vm13, %v567_v54, %v562_v59  ;;  %v576_v3 = vsel %vm1440_vm14, %v561_v53, %v568_v55  ;;  %v575_v9 = vsel %vm1444_vm15, %v562_v59, %v567_v54 }
 0x3e9   : > { %v847_v62 = vpack.c.bf16 %v556_v12, %v570_v56  ;;  %v849_v2 = vpack.c.bf16 %v555_v14, %v569_v63 }
 0x3eb   : > { %846 = vmatpush1.bf16.msra.mxu1 %v845_v61 }
 0x3ec   : > { %848 = vmatprep.subr.bf16.mxu1 %v847_v62 }
 0x3ef   : > { %850 = vmatpush1.bf16.msra.mxu1 %v849_v2 }
 0x3f0   : > { %616 = vmatprep.subr.mxu1 %v576_v3 }
 0x3f3   : > { %617 = vmatpush1.msra.mxu1 %v575_v9 }
 0x3f4   : > { %811 = vmatmul.mubr.msk.f32.vlgmr.msra.gmra.mrb[0].mxu1 %vm402_vm0, %v244_v41 }
 0x4c7   : > { %v666_v42 = vpop.f32.mrb[0].mxu1 }
 0x4c8   : > { %v668_v60 = vpop.f32.mrb[1].mxu1  ;;  %v675_v4 = vmul.f32 %v666_v42, %v666_v42 }
 0x4c9   : > { %v676_v5 = vmul.f32 %v668_v60, %v668_v60  ;;  %v671_v6 = vadd.f32 %v668_v60, %v666_v42 }
 0x4cb   : > { %672 = vadd.xlane.f32.xlu0 %v671_v6  ;;  %v677_v57 = vadd.f32 %v676_v5, %v675_v4 }
 0x4cd   : > { %678 = vadd.xlane.f32.xlu1 %v677_v57 }
 0x558   : > { %v673_v7 = vpop.xlane.xlu0 %672 }
 0x559   : > { %v674_v8 = vmul.f32 0.00390625, %v673_v7 }
 0x55a   : > { %v679_v10 = vpop.xlane.xlu1 %678 }
 0x55b   : > { %v680_v11 = vmul.f32 0.00390625, %v679_v10  ;;  %v681_v12 = vmul.f32 %v674_v8, %v674_v8  ;;  %v685_v15 = vsub.f32 %v666_v42, %v674_v8  ;;  %v686_v13 = vsub.f32 %v668_v60, %v674_v8 }
 0x55d   : > { %v682_v58 = vsub.f32 %v680_v11, %v681_v12 }
 0x55f   : > { %v683_v14 = vadd.f32 1e-05, %v682_v58 }
 0x561   : > { %966 = vrsqrt.f32 %v683_v14 }
 0x56b   : > { %v967_v16 = vpop.eup %966 }
 0x56c   : > { %v687_v17 = vmul.f32 %v967_v16, %v685_v15  ;;  %v688_v18 = vmul.f32 %v967_v16, %v686_v13 }
 0x56e   : > { %v689_v19 = vadd.f32 %v687_v17, %v1340_v0  ;;  %v690_v29 = vadd.f32 %v688_v18, %v1346_v1 }
 0x570   : > { %691 = vst [vmem:[%s238_s11] sm:$0xff] %v689_v19  ;;  %692 = vst [vmem:[%s238_s11 + $0x8] sm:$0xff] %v690_v29 }
 0x571   : > { %1067 = shalt.err (!%p1064_p7)
}
 0x572   : > { %s1068_s30 = scalar_lea.hbm %s1589_s24, 256  ;;  %s1072_s21 = scalar_lea.hbm %s1637_s4, 512 }
 0x573   : > { %p1069_p10 = scmp.ne.s32.totalorder %s1589_s24, %s1068_s30  ;;  %p1073_p0 = scmp.lt.u32.totalorder %s1589_s24, %s1637_s4 }
 0x574   : > { %p1074_p11 = scmp.lt.u32.totalorder %s1072_s21, %s1068_s30  ;;  %p1076_p2 = scmp.lt.u32.totalorder %s1068_s30, %s1589_s24 }
 0x575   : > { %p1070_p13 = pnand %p1069_p10, %p1280_p6 }
 0x576   : > { %p1075_p9 = por %p1074_p11, %p1073_p0 }
 0x577   : > { %p1071_p5 = pneg %p1070_p13 }
 0x578   : > { %p1077_p1 = por %p1076_p2, %p1075_p9 }
 0x57a   : > { %p1078_p4 = pnand %p1077_p1, %p1071_p5 }
 0x57c   : > { %1081 = shalt.err (!%p1078_p4)
}
 0x57d   : > { %861 = dma.vmem_to_hbm [thread:$0]  (%p1280_p6), %s1591_s14, 256, %s1589_s24, %s694_s19  }
 0x57e PF: > { %s720_s7 = sand.u32 1, %s1112_s15   ;;  %p1668_p8 = scmp.ne.s32.totalorder %s1642_s22, 0 }
 0x57f   : > { %p1669_p12 = scmp.ge.s32.totalorder %s1124_s18, 2  ;;  %s721_s10 = scalar_lea.sflag [#allocation5], %s720_s7 }
 0x581   : > { %p875_p3 = pnand %p1669_p12, %p1668_p8 }
 0x583   : > { %1107 = dma.done.wait (!%p875_p3), %s721_s10, 256  }
 0x584   : > { %1109 = vsyncadd (!%p875_p3), %s721_s10, 4294967040  ;;  %p18_p7 = scmp.ge.s32.totalorder %s1217_s29, 4   ;;  %s1670_s15 = smov %s1116_s16 }
 0x585   : > { %s1671_s16 = smov %s1120_s17  ;;  %s1672_s17 = smov %s1276_s28 }
 0x586   : > { %s1673_s18 = smov %s1217_s29  ;;  %20 = sbr.rel (!%p18_p7) target bundleno = 6 (0x6), region = 90 }
 0x58d   :  { %726 = vsyncpa [#allocation4], 1 }
 0x58e   :  { %728 = vsyncpa [#allocation4 + $0x1], 1 }
 0x58f   :  { %729 = vsyncpa [#allocation7], 1 }
 0x590   :  { %730 = vsyncpa [#allocation5], 1 }
 0x591   :  { %732 = vsyncpa [#allocation5 + $0x1], 1 }

</bundles_post_ra>
